<compile_context>
chip_gen: v7x
topology: tpu7x:2x2x1
jax: 0.10.0
libtpu: 0.0.40
codegen_flags: <defaults>
</compile_context>

<pallas_src>
import functools

import jax
import jax.numpy as jnp
from jax.experimental import pallas as pl
from jax.experimental.pallas import tpu as pltpu


_ALIGN = 16  # bf16 sublane packing -> keep batch tiles multiples of 16


def _round_up(n, m):
    return ((n + m - 1) // m) * m


# ------------------------------ kernel ------------------------------------

def _noisy_mlp_kernel(x_ref, w1_ref, b1_ref, w2_ref, b2_ref, w3_ref, b3_ref,
                      out_ref):
    # x block: [TB, n_states] bf16 operands, f32 MXU accumulation.
    x = x_ref[...]

    # fc1 + relu
    h1 = jnp.dot(x, w1_ref[...], preferred_element_type=jnp.float32) + b1_ref[...]
    h1 = jnp.maximum(h1, 0.0).astype(jnp.bfloat16)

    # noisy_fc2 (effective weight pre-composed outside) + relu
    h2 = jnp.dot(h1, w2_ref[...], preferred_element_type=jnp.float32) + b2_ref[...]
    h2 = jnp.maximum(h2, 0.0).astype(jnp.bfloat16)

    # noisy_fc3 (no activation); output lane-padded to a multiple of 128,
    # stored as bf16 to halve the dominant HBM writeback.
    out = jnp.dot(h2, w3_ref[...], preferred_element_type=jnp.float32) + b3_ref[...]
    out_ref[...] = out.astype(out_ref.dtype)


# ------------------------------ wrapper ------------------------------------

@functools.partial(jax.jit, static_argnames=("n_actions", "block_b"))
def noisy_qnetwork_forward(x, eff, *, n_actions, block_b=2048):
    """x: [B, n_states] float.  eff: dict from compose_effective_params()."""
    B, n_states = x.shape
    H = eff["w1"].shape[1]
    A_pad = eff["w3"].shape[1]

    # Ship activations as bf16 (halves x DMA, removes per-step cast).
    x = x.astype(jnp.bfloat16)

    # Batch tile: multiple of 16 (bf16 sublanes), clamped to the padded batch.
    B_al = _round_up(B, _ALIGN)
    tb = min(_round_up(block_b, _ALIGN), B_al)
    # Guarantee >= 2 grid steps when the batch allows it, so "parallel" can
    # shard the batch across both v7x TensorCores (no-op on v5e/v6e).
    if B_al // tb < 2 and B_al >= 2 * _ALIGN:
        tb = _round_up((B_al + 1) // 2, _ALIGN)
    B_pad = _round_up(B, tb)
    if B_pad != B:
        x = jnp.pad(x, ((0, B_pad - B), (0, 0)))
    grid = (B_pad // tb,)

    # VMEM budget: per-row intermediates (~2.6 KB) + resident weights (~0.2 MB).
    bytes_per_row = (
        2 * (2 * n_states)          # x tile bf16, double-buffered
        + 2 * (2 * A_pad)           # out tile bf16, double-buffered
        + 4 * (H + H + A_pad)       # f32 h1 / h2 / out intermediates
        + 2 * (H + H)               # bf16 casts of h1 / h2
    )
    weight_bytes = 2 * (n_states * H + H * H + H * A_pad) * 2 + 4 * (H + H + A_pad) * 2
    vmem_limit = int(min(48 * 2**20, max(2 * (tb * bytes_per_row + weight_bytes),
                                         16 * 2**20)))

    flops = 2 * B_pad * (n_states * H + H * H + H * A_pad)
    bytes_accessed = (
        B_pad * n_states * 2            # x (bf16)
        + B_pad * A_pad * 2             # out (bf16)
        + (n_states * H + H * H + H * A_pad) * 2   # weights (bf16)
        + (H + H + A_pad) * 4           # biases (f32)
    )

    out = pl.pallas_call(
        _noisy_mlp_kernel,
        out_shape=jax.ShapeDtypeStruct((B_pad, A_pad), jnp.bfloat16),
        grid_spec=pltpu.PrefetchScalarGridSpec(
            num_scalar_prefetch=0,
            grid=grid,
            in_specs=[
                pl.BlockSpec((tb, n_states), lambda i: (i, 0)),   # x tile
                pl.BlockSpec((n_states, H), lambda i: (0, 0)),    # w1 (resident)
                pl.BlockSpec((1, H), lambda i: (0, 0)),           # b1
                pl.BlockSpec((H, H), lambda i: (0, 0)),           # w2_eff
                pl.BlockSpec((1, H), lambda i: (0, 0)),           # b2_eff
                pl.BlockSpec((H, A_pad), lambda i: (0, 0)),       # w3_eff (padded)
                pl.BlockSpec((1, A_pad), lambda i: (0, 0)),       # b3_eff (padded)
            ],
            out_specs=pl.BlockSpec((tb, A_pad), lambda i: (i, 0)),
        ),
        compiler_params=pltpu.CompilerParams(
            dimension_semantics=("parallel",),
            vmem_limit_bytes=vmem_limit),
        cost_estimate=pl.CostEstimate(
            flops=flops, transcendentals=0, bytes_accessed=bytes_accessed),
    )(x, eff["w1"], eff["b1"], eff["w2"], eff["b2"], eff["w3"], eff["b3"])

    # Slice real rows / action columns and restore f32 for the caller.
    return out[:B, :n_actions].astype(jnp.float32)


# --------------------- parameter construction / glue -----------------------

def _scale_noise(key, size):
    # torch: x = randn(size); sign(x) * sqrt(|x|)
    z = jax.random.normal(key, (size,), dtype=jnp.float32)
    return jnp.sign(z) * jnp.sqrt(jnp.abs(z))


def init_raw_params(key, n_states, n_actions, hidden_dim=128, std_init=0.4):
    """Raw parameters in PyTorch layout ([out, in] weights, [out] biases)."""
    ks = jax.random.split(key, 12)

    bound1 = 1.0 / jnp.sqrt(float(n_states))
    w1 = jax.random.uniform(ks[0], (hidden_dim, n_states), jnp.float32, -bound1, bound1)
    b1 = jax.random.uniform(ks[1], (hidden_dim,), jnp.float32, -bound1, bound1)

    mu2 = 1.0 / jnp.sqrt(float(hidden_dim))
    w2_mu = jax.random.uniform(ks[2], (hidden_dim, hidden_dim), jnp.float32, -mu2, mu2)
    w2_sigma = jnp.full((hidden_dim, hidden_dim), std_init / hidden_dim ** 0.5, jnp.float32)
    b2_mu = jax.random.uniform(ks[3], (hidden_dim,), jnp.float32, -mu2, mu2)
    b2_sigma = jnp.full((hidden_dim,), std_init / hidden_dim ** 0.5, jnp.float32)
    w2_eps = jnp.outer(_scale_noise(ks[5], hidden_dim), _scale_noise(ks[4], hidden_dim))
    b2_eps = _scale_noise(ks[6], hidden_dim)

    mu3 = 1.0 / jnp.sqrt(float(hidden_dim))
    w3_mu = jax.random.uniform(ks[7], (n_actions, hidden_dim), jnp.float32, -mu3, mu3)
    w3_sigma = jnp.full((n_actions, hidden_dim), std_init / hidden_dim ** 0.5, jnp.float32)
    b3_mu = jax.random.uniform(ks[8], (n_actions,), jnp.float32, -mu3, mu3)
    b3_sigma = jnp.full((n_actions,), std_init / n_actions ** 0.5, jnp.float32)
    w3_eps = jnp.outer(_scale_noise(ks[10], n_actions), _scale_noise(ks[9], hidden_dim))
    b3_eps = _scale_noise(ks[11], n_actions)

    return dict(w1=w1, b1=b1,
                w2_mu=w2_mu, w2_sigma=w2_sigma, w2_eps=w2_eps,
                b2_mu=b2_mu, b2_sigma=b2_sigma, b2_eps=b2_eps,
                w3_mu=w3_mu, w3_sigma=w3_sigma, w3_eps=w3_eps,
                b3_mu=b3_mu, b3_sigma=b3_sigma, b3_eps=b3_eps)


def compose_effective_params(raw, training=True, weight_dtype=jnp.bfloat16):
    """Compose noisy effective weights once (call after reset_noise()).

    Composition is done in f32 (v5e-safe); only the final effective weights are
    cast to bf16.  Weights are transposed to [in, out]; biases become [1, out]
    f32 rows.  The action dim is zero-padded to a multiple of 128 lanes.
    NOTE: don't reuse the bf16 effective weights for sigma-gradient computation.
    """
    if training:
        w2 = raw["w2_mu"] + raw["w2_sigma"] * raw["w2_eps"]
        b2 = raw["b2_mu"] + raw["b2_sigma"] * raw["b2_eps"]
        w3 = raw["w3_mu"] + raw["w3_sigma"] * raw["w3_eps"]
        b3 = raw["b3_mu"] + raw["b3_sigma"] * raw["b3_eps"]
    else:
        w2, b2, w3, b3 = raw["w2_mu"], raw["b2_mu"], raw["w3_mu"], raw["b3_mu"]

    n_actions = w3.shape[0]
    a_pad = _round_up(n_actions, 128)

    w3_t = jnp.zeros((w3.shape[1], a_pad), jnp.float32).at[:, :n_actions].set(w3.T)
    b3_row = jnp.zeros((1, a_pad), jnp.float32).at[:, :n_actions].set(b3.reshape(1, -1))

    row = lambda v: v.reshape(1, -1).astype(jnp.float32)
    return {
        "w1": raw["w1"].T.astype(weight_dtype), "b1": row(raw["b1"]),
        "w2": w2.T.astype(weight_dtype),        "b2": row(b2),
        "w3": w3_t.astype(weight_dtype),        "b3": b3_row,
    }


# ------------------------------ references ---------------------------------

def reference_forward_f32(x, raw):
    """Full-precision reference of the PyTorch forward (training mode)."""
    w2 = raw["w2_mu"] + raw["w2_sigma"] * raw["w2_eps"]
    b2 = raw["b2_mu"] + raw["b2_sigma"] * raw["b2_eps"]
    w3 = raw["w3_mu"] + raw["w3_sigma"] * raw["w3_eps"]
    b3 = raw["b3_mu"] + raw["b3_sigma"] * raw["b3_eps"]
    h1 = jnp.maximum(x @ raw["w1"].T + raw["b1"], 0.0)
    h2 = jnp.maximum(h1 @ w2.T + b2, 0.0)
    return h2 @ w3.T + b3


def reference_forward_bf16(x, eff, n_actions):
    """Pure-JAX reference that mirrors the kernel's bf16/f32 numerics."""
    def mm(a, w):
        return jnp.dot(a, w, preferred_element_type=jnp.float32)
    xb = x.astype(jnp.bfloat16)
    h1 = jnp.maximum(mm(xb, eff["w1"]) + eff["b1"], 0.0).astype(jnp.bfloat16)
    h2 = jnp.maximum(mm(h1, eff["w2"]) + eff["b2"], 0.0).astype(jnp.bfloat16)
    out = (mm(h2, eff["w3"]) + eff["b3"]).astype(jnp.bfloat16)
    return out[:, :n_actions].astype(jnp.float32)


# --------------------------------- demo -------------------------------------

if __name__ == "__main__":
    n_states, n_actions, hidden_dim, batch = 16, 4, 128, 20

    key = jax.random.PRNGKey(0)
    k_x, k_p = jax.random.split(key)
    x = jax.random.normal(k_x, (batch, n_states), dtype=jnp.float32)

    raw = init_raw_params(k_p, n_states, n_actions, hidden_dim)
    eff = compose_effective_params(raw, training=True)   # redo only at reset_noise()

    ref_bf16 = reference_forward_bf16(x, eff, n_actions)
    ref_f32 = reference_forward_f32(x, raw)

    # Path 1: small block_b so the multi-step grid + batch-padding path runs.
    out_small = noisy_qnetwork_forward(x, eff, n_actions=n_actions, block_b=8)
    jax.block_until_ready(out_small)
    assert out_small.shape == (batch, n_actions)

    # Path 2: default large block_b -- exercises the "split into >=2 grid
    # steps" (v7x two-TensorCore) logic since the whole batch fits one tile.
    out_big = noisy_qnetwork_forward(x, eff, n_actions=n_actions)
    jax.block_until_ready(out_big)
    assert out_big.shape == (batch, n_actions)

    for out in (out_small, out_big):
        # Check vs. a reference with matching bf16/f32 numerics (incl. bf16 out).
        assert jnp.allclose(out, ref_bf16, atol=1e-2, rtol=1e-2), (
            float(jnp.max(jnp.abs(out - ref_bf16))))
        # Looser semantic check vs. the full-f32 PyTorch-style forward.
        assert jnp.allclose(out, ref_f32, atol=5e-2, rtol=5e-2), (
            float(jnp.max(jnp.abs(out - ref_f32))))

    print("KERNEL_OK")
</pallas_src>

<mosaic_0001>
module attributes {stable_mosaic.version = 11 : i64} {
  func.func @_noisy_mlp_kernel(%arg0: i32, %arg1: memref<16x16xbf16, #tpu.memory_space<vmem>>, %arg2: memref<16x128xbf16, #tpu.memory_space<vmem>>, %arg3: memref<1x128xf32, #tpu.memory_space<vmem>>, %arg4: memref<128x128xbf16, #tpu.memory_space<vmem>>, %arg5: memref<1x128xf32, #tpu.memory_space<vmem>>, %arg6: memref<128x128xbf16, #tpu.memory_space<vmem>>, %arg7: memref<1x128xf32, #tpu.memory_space<vmem>>, %arg8: memref<16x128xbf16, #tpu.memory_space<vmem>>) attributes {dimension_semantics = [#tpu.dimension_semantics<parallel>], iteration_bounds = array<i64: 2>, scalar_prefetch = 0 : i64, scratch_operands = 0 : i64, tpu.core_type = #tpu.core_type<tc>, window_params = [{transform_indices = @transform_0, window_bounds = array<i64: 16, 16>}, {pipeline_mode = #tpu.pipeline_mode<synchronous>, transform_indices = @transform_1, window_bounds = array<i64: 16, 128>}, {pipeline_mode = #tpu.pipeline_mode<synchronous>, transform_indices = @transform_2, window_bounds = array<i64: 1, 128>}, {pipeline_mode = #tpu.pipeline_mode<synchronous>, transform_indices = @transform_3, window_bounds = array<i64: 128, 128>}, {pipeline_mode = #tpu.pipeline_mode<synchronous>, transform_indices = @transform_4, window_bounds = array<i64: 1, 128>}, {pipeline_mode = #tpu.pipeline_mode<synchronous>, transform_indices = @transform_5, window_bounds = array<i64: 128, 128>}, {pipeline_mode = #tpu.pipeline_mode<synchronous>, transform_indices = @transform_6, window_bounds = array<i64: 1, 128>}, {transform_indices = @transform_7, window_bounds = array<i64: 16, 128>}]} {
    %c0 = arith.constant 0 : index
    %c0_0 = arith.constant 0 : index
    %0 = vector.load %arg1[%c0, %c0_0] : memref<16x16xbf16, #tpu.memory_space<vmem>>, vector<16x16xbf16>
    %c0_1 = arith.constant 0 : index
    %c0_2 = arith.constant 0 : index
    %1 = vector.load %arg2[%c0_1, %c0_2] : memref<16x128xbf16, #tpu.memory_space<vmem>>, vector<16x128xbf16>
    %cst = arith.constant dense<0.000000e+00> : vector<16x128xf32>
    %2 = tpu.matmul %0, %1, %cst {dimension_numbers = #tpu.dot_dimension_numbers<[1], [0], [0], [1], [0, 0, 1, 1], [], []>} : vector<16x16xbf16>, vector<16x128xbf16>, vector<16x128xf32> -> vector<16x128xf32>
    %c0_3 = arith.constant 0 : index
    %c0_4 = arith.constant 0 : index
    %3 = vector.load %arg3[%c0_3, %c0_4] : memref<1x128xf32, #tpu.memory_space<vmem>>, vector<1x128xf32>
    %4 = vector.broadcast %3 : vector<1x128xf32> to vector<16x128xf32>
    %5 = arith.addf %2, %4 : vector<16x128xf32>
    %cst_5 = arith.constant 0.000000e+00 : f32
    %6 = vector.broadcast %cst_5 : f32 to vector<16x128xf32>
    %7 = arith.maximumf %5, %6 : vector<16x128xf32>
    %8 = arith.truncf %7 : vector<16x128xf32> to vector<16x128xbf16>
    %c0_6 = arith.constant 0 : index
    %c0_7 = arith.constant 0 : index
    %9 = vector.load %arg4[%c0_6, %c0_7] : memref<128x128xbf16, #tpu.memory_space<vmem>>, vector<128x128xbf16>
    %cst_8 = arith.constant dense<0.000000e+00> : vector<16x128xf32>
    %10 = tpu.matmul %8, %9, %cst_8 {dimension_numbers = #tpu.dot_dimension_numbers<[1], [0], [0], [1], [0, 0, 1, 1], [], []>} : vector<16x128xbf16>, vector<128x128xbf16>, vector<16x128xf32> -> vector<16x128xf32>
    %c0_9 = arith.constant 0 : index
    %c0_10 = arith.constant 0 : index
    %11 = vector.load %arg5[%c0_9, %c0_10] : memref<1x128xf32, #tpu.memory_space<vmem>>, vector<1x128xf32>
    %12 = vector.broadcast %11 : vector<1x128xf32> to vector<16x128xf32>
    %13 = arith.addf %10, %12 : vector<16x128xf32>
    %cst_11 = arith.constant 0.000000e+00 : f32
    %14 = vector.broadcast %cst_11 : f32 to vector<16x128xf32>
    %15 = arith.maximumf %13, %14 : vector<16x128xf32>
    %16 = arith.truncf %15 : vector<16x128xf32> to vector<16x128xbf16>
    %c0_12 = arith.constant 0 : index
    %c0_13 = arith.constant 0 : index
    %17 = vector.load %arg6[%c0_12, %c0_13] : memref<128x128xbf16, #tpu.memory_space<vmem>>, vector<128x128xbf16>
    %cst_14 = arith.constant dense<0.000000e+00> : vector<16x128xf32>
    %18 = tpu.matmul %16, %17, %cst_14 {dimension_numbers = #tpu.dot_dimension_numbers<[1], [0], [0], [1], [0, 0, 1, 1], [], []>} : vector<16x128xbf16>, vector<128x128xbf16>, vector<16x128xf32> -> vector<16x128xf32>
    %c0_15 = arith.constant 0 : index
    %c0_16 = arith.constant 0 : index
    %19 = vector.load %arg7[%c0_15, %c0_16] : memref<1x128xf32, #tpu.memory_space<vmem>>, vector<1x128xf32>
    %20 = vector.broadcast %19 : vector<1x128xf32> to vector<16x128xf32>
    %21 = arith.addf %18, %20 : vector<16x128xf32>
    %22 = arith.truncf %21 : vector<16x128xf32> to vector<16x128xbf16>
    %c0_17 = arith.constant 0 : index
    %c0_18 = arith.constant 0 : index
    %23 = vector.load %arg8[%c0_17, %c0_18] : memref<16x128xbf16, #tpu.memory_space<vmem>>, vector<16x128xbf16>
    tpu.vector_store %arg8[%c0_17, %c0_18], %22 {strides = array<i32>} : memref<16x128xbf16, #tpu.memory_space<vmem>>, vector<16x128xbf16>,
    return
  }
  func.func @transform_0(%arg0: i32) -> (i32, i32) {
    %c0_i32 = arith.constant 0 : i32
    %c0_i32_0 = arith.constant 0 : i32
    return %arg0, %c0_i32 : i32, i32
  }
  func.func @transform_1(%arg0: i32) -> (i32, i32) {
    %c0_i32 = arith.constant 0 : i32
    %c0_i32_0 = arith.constant 0 : i32
    %c0_i32_1 = arith.constant 0 : i32
    return %c0_i32, %c0_i32_0 : i32, i32
  }
  func.func @transform_2(%arg0: i32) -> (i32, i32) {
    %c0_i32 = arith.constant 0 : i32
    %c0_i32_0 = arith.constant 0 : i32
    %c0_i32_1 = arith.constant 0 : i32
    return %c0_i32, %c0_i32_0 : i32, i32
  }
  func.func @transform_3(%arg0: i32) -> (i32, i32) {
    %c0_i32 = arith.constant 0 : i32
    %c0_i32_0 = arith.constant 0 : i32
    %c0_i32_1 = arith.constant 0 : i32
    return %c0_i32, %c0_i32_0 : i32, i32
  }
  func.func @transform_4(%arg0: i32) -> (i32, i32) {
    %c0_i32 = arith.constant 0 : i32
    %c0_i32_0 = arith.constant 0 : i32
    %c0_i32_1 = arith.constant 0 : i32
    return %c0_i32, %c0_i32_0 : i32, i32
  }
  func.func @transform_5(%arg0: i32) -> (i32, i32) {
    %c0_i32 = arith.constant 0 : i32
    %c0_i32_0 = arith.constant 0 : i32
    %c0_i32_1 = arith.constant 0 : i32
    return %c0_i32, %c0_i32_0 : i32, i32
  }
  func.func @transform_6(%arg0: i32) -> (i32, i32) {
    %c0_i32 = arith.constant 0 : i32
    %c0_i32_0 = arith.constant 0 : i32
    %c0_i32_1 = arith.constant 0 : i32
    return %c0_i32, %c0_i32_0 : i32, i32
  }
  func.func @transform_7(%arg0: i32) -> (i32, i32) {
    %c0_i32 = arith.constant 0 : i32
    %c0_i32_0 = arith.constant 0 : i32
    return %arg0, %c0_i32 : i32, i32
  }
}

</mosaic_0001>

<bundles_post_ra>
// kernel: noisy_qnetwork_forward.1
= control target key start
LH: loop header
LB: loop body
LE: loop exit
PB: predicated region body
PF: predicated region fallthrough
CT: control target
= control target key end

     0   :  { %12 = vsyncpa [#allocation3], 0  ;;  %s909_s24 = smov 0   ;;  %s1034_s0 = inlined_call_operand.vmem [shape: bf16[32,16], index: 0, kind: input, shape index: {}]   ;;  %s1035_s1 = inlined_call_operand.vmem [shape: bf16[16,128], index: 1, kind: input, shape index: {}]   ;;  %s1036_s2 = inlined_call_operand.vmem [shape: f32[1,128], index: 2, kind: input, shape index: {}]   ;;  %s1037_s3 = inlined_call_operand.vmem [shape: bf16[128,128], index: 3, kind: input, shape index: {}]   ;;  %s1038_s4 = inlined_call_operand.vmem [shape: f32[1,128], index: 4, kind: input, shape index: {}]   ;;  %s1039_s5 = inlined_call_operand.hbm [shape: bf16[128,128], index: 5, kind: input, shape index: {}]   ;;  %s1040_s6 = inlined_call_operand.vmem [shape: f32[1,128], index: 6, kind: input, shape index: {}]   ;;  %s1041_s7 = inlined_call_operand.vmem [shape: bf16[32,128], index: 7, kind: output, shape index: {}]  }
   0x1 LB: > { %s673_s25 = sadd.s32 4294967295, %s862_s24   ;;  %p675_p0 = scmp.ge.s32.totalorder %s862_s24, 1  ;;  %s862_s24 = sphi %s909_s24, %s18_s24  }
   0x2   : > { %p201_p1 = scmp.lt.s32.totalorder %s862_s24, 3  ;;  %s864_s26 = smov [#allocation2]  }
   0x3   : > { %s225_s27 = sshll.u32 %s864_s26, 4  ;;  %p923_p3 = scmp.eq.s32.totalorder %s673_s25, 0  ;;  %s226_s27 = int_to_ptr.vmem [resolvable:$true] %s225_s27 }
   0x4   : > { %p917_p2 = pnand %p675_p0, %p201_p1  ;;  %s824_s10 = scalar_lea.hbm %s1039_s5, 1024 }
   0x5   : > { %s1046_s29 = scalar_select %p923_p3, 1, 0 }
   0x6   : > { %s1045_s28 = scalar_select %p917_p2, 1, 0 }
   0x7   : > { %p787_p4 = pneg %p917_p2  ;;  %p825_p6 = scmp.ne.s32.totalorder %s1039_s5, %s824_s10 }
   0x8   : > { %p831_p10 = scmp.lt.u32.totalorder %s824_s10, %s1039_s5 }
   0x9   : > { %p931_p5 = pnand %p923_p3, %p787_p4 }
   0xb   : > { %p826_p7 = pneg %p931_p5 }
   0xd   : > { %p827_p8 = pnand %p826_p7, %p825_p6 }
   0xf   : > { %p828_p9 = pneg %p827_p8 }
  0x11   : > { %p833_p11 = pnand %p831_p10, %p828_p9 }
  0x13   : > { %836 = shalt.err (!%p833_p11)
}
  0x14   : > { %s837_s15 = scalar_lea.vmem %s226_s27, 1024  ;;  %p845_p1 = scmp.lt.s32.totalorder %s226_s27, %s226_s27 }
  0x15   : > { %p838_p12 = scmp.ne.s32.totalorder %s226_s27, %s837_s15  ;;  %p846_p4 = scmp.lt.s32.totalorder %s837_s15, %s837_s15 }
  0x17   : > { %p840_p13 = pnand %p838_p12, %p826_p7  ;;  %p847_p3 = por %p846_p4, %p845_p1 }
  0x19   : > { %p841_p0 = pneg %p840_p13 }
  0x1b   : > { %p848_p2 = pnand %p847_p3, %p841_p0 }
  0x1d   : > { %851 = shalt.err (!%p848_p2)
}
  0x1e   : > { %s865_s16 = smov 64   ;;  %s866_s17 = smov 4  }
  0x1f   : > { %790 = dma.hbm_to_vmem [thread:$0]  (!%p931_p5), %s1039_s5, 1024, %s226_s27, [#allocation3], %s865_s16, %s865_s16, %s866_s17  }
  0x20   : > { %p1048_p6 = scmp.ne.s32.totalorder %s1045_s28, 0 }
  0x21   : > { %p1049_p8 = scmp.ne.s32.totalorder (!%p1048_p6), %s1046_s29, 0 }
  0x22   : > { %253 = sbr.rel (%p1048_p6) target bundleno = 708 (0x2c4), region = 48 }
  0x29   : > { %857 = dma.done.wait (%p1049_p8), [#allocation3], 1024  }
  0x2a   : > { %859 = vsyncadd (%p1049_p8), [#allocation3], 4294966272  ;;  %s680_s20 = sshll.u32 %s673_s25, 1  ;;  %v867_v0 = vmov 0.0   ;;  %vm868_vm0 = vmmov 0   ;;  %v806_v1 = vld [vmem:[%s1035_s1] sm:$0xff]  }
  0x2b   : > { %737 = vmatprep.subr.bf16.mxu0 %v867_v0  ;;  %739 = vmatprep.mubr.msk.bf16.mxu0 %vm868_vm0, %v867_v0  ;;  %p286_p2 = scmp.lt.s32.totalorder %s680_s20, 3  ;;  %vm320_vm1 = vcmask 130048   ;;  %v808_v3 = vld [vmem:[%s1037_s3] sm:$0xff]   ;;  %v809_v4 = vld [vmem:[%s1037_s3 + $0x8] sm:$0xff]   ;;  %v810_v5 = vld [vmem:[%s1037_s3 + $0x10] sm:$0xff]  }
  0x2c   : > { %743 = vmatprep.subr.bf16.mxu1 %v867_v0  ;;  %759 = vmatprep.mubr.msk.bf16.mxu1 %vm868_vm0, %v867_v0  ;;  %v811_v6 = vld [vmem:[%s1037_s3 + $0x18] sm:$0xff]   ;;  %v812_v7 = vld [vmem:[%s1037_s3 + $0x20] sm:$0xff]   ;;  %v813_v8 = vld [vmem:[%s1037_s3 + $0x28] sm:$0xff]  }
  0x2d   : > { %s1051_s20 = smov (!%p286_p2, %s680_s20), 3  ;;  %738 = vmatpush3.bf16.msra.mxu0 %v806_v1  ;;  %744 = vmatpush3.bf16.msra.mxu1 %v808_v3  ;;  %v814_v9 = vld [vmem:[%s1037_s3 + $0x30] sm:$0xff]   ;;  %v815_v10 = vld [vmem:[%s1037_s3 + $0x38] sm:$0xff]   ;;  %v816_v11 = vld [vmem:[#allocation2] sm:$0xff]  }
  0x2e   : > { %s681_s21 = sshll.u32 %s1051_s20, 2  ;;  %763 = vmatprep.subr.bf16.mxu0 %v867_v0  ;;  %745 = vmatprep.subr.bf16.mxu1 %v867_v0  ;;  %v817_v12 = vld [vmem:[#allocation2 + $0x8] sm:$0xff]   ;;  %v818_v13 = vld [vmem:[#allocation2 + $0x10] sm:$0xff]   ;;  %v819_v14 = vld [vmem:[#allocation2 + $0x18] sm:$0xff]  }
  0x2f   : > { %s289_s25 = scalar_lea.vmem %s1034_s0, %s681_s21  ;;  %v820_v15 = vld [vmem:[#allocation2 + $0x20] sm:$0xff]   ;;  %v821_v16 = vld [vmem:[#allocation2 + $0x28] sm:$0xff]   ;;  %v822_v27 = vld [vmem:[#allocation2 + $0x30] sm:$0xff]   ;;  %s295_s9 = scalar_lea.vmem %s1041_s7, %s681_s21 }
  0x30   : > { %v807_v2 = vld [vmem:[%s289_s25] sm:$0xff]   ;;  %v823_v28 = vld [vmem:[#allocation2 + $0x38] sm:$0xff]  }
  0x31   : > { %740 = vmatmul.mubr.msk.bf16.vlgmr.msra.gmra.mrb[0].mxu0 %vm320_vm1, %v807_v2  ;;  %746 = vmatpush3.bf16.msra.mxu1 %v809_v4  ;;  %v684_v17 = vld [vmem:[%s1036_s2] ss:$0 sm:$0xff] }
  0x32   : > { %779 = vmatprep.mubr.msk.bf16.mxu0 %vm868_vm0, %v867_v0  ;;  %747 = vmatprep.subr.bf16.mxu1 %v867_v0  ;;  %v688_v29 = vld [vmem:[%s1038_s4] ss:$0 sm:$0xff] }
  0x33   : > { %764 = vmatpush3.bf16.msra.mxu0 %v816_v11  ;;  %v697_v39 = vld [vmem:[%s1040_s6] ss:$0 sm:$0xff] }
  0x34   : > { %765 = vmatprep.subr.bf16.mxu0 %v867_v0 }
  0x35   : > { %748 = vmatpush3.bf16.msra.mxu1 %v810_v5 }
  0x36   : > { %749 = vmatprep.subr.bf16.mxu1 %v867_v0 }
  0x37   : > { %766 = vmatpush3.bf16.msra.mxu0 %v817_v12 }
  0x38   : > { %767 = vmatprep.subr.bf16.mxu0 %v867_v0 }
  0x39   : > { %750 = vmatpush3.bf16.msra.mxu1 %v811_v6 }
  0x3a   : > { %751 = vmatprep.subr.bf16.mxu1 %v867_v0 }
  0x3b   : > { %768 = vmatpush3.bf16.msra.mxu0 %v818_v13 }
  0x3c   : > { %769 = vmatprep.subr.bf16.mxu0 %v867_v0 }
  0x3d   : > { %752 = vmatpush3.bf16.msra.mxu1 %v812_v7 }
  0x3e   : > { %753 = vmatprep.subr.bf16.mxu1 %v867_v0 }
  0x3f   : > { %770 = vmatpush3.bf16.msra.mxu0 %v819_v14 }
  0x40   : > { %771 = vmatprep.subr.bf16.mxu0 %v867_v0 }
  0x41   : > { %754 = vmatpush3.bf16.msra.mxu1 %v813_v8 }
  0x42   : > { %755 = vmatprep.subr.bf16.mxu1 %v867_v0 }
  0x43   : > { %772 = vmatpush3.bf16.msra.mxu0 %v820_v15 }
  0x44   : > { %773 = vmatprep.subr.bf16.mxu0 %v867_v0 }
  0x45   : > { %756 = vmatpush3.bf16.msra.mxu1 %v814_v9 }
  0x46   : > { %757 = vmatprep.subr.bf16.mxu1 %v867_v0 }
  0x47   : > { %774 = vmatpush3.bf16.msra.mxu0 %v821_v16 }
  0x48   : > { %775 = vmatprep.subr.bf16.mxu0 %v867_v0 }
  0x49   : > { %758 = vmatpush3.bf16.msra.mxu1 %v815_v10 }
  0x4b   : > { %776 = vmatpush3.bf16.msra.mxu0 %v822_v27 }
  0x4c   : > { %777 = vmatprep.subr.bf16.mxu0 %v867_v0 }
  0x4f   : > { %778 = vmatpush3.bf16.msra.mxu0 %v823_v28 }
 0x104   : > { %v358_v18 = vpop.f32.mrb[0].mxu0 }
 0x105   : > { %v359_v19 = vadd.f32 %v684_v17, %v358_v18  ;;  %v741_v20 = vpop.f32.mrb[1].mxu0 }
 0x106   : > { %v361_v21 = vpop.f32.mrb[2].mxu0 }
 0x107   : > { %v362_v22 = vadd.f32 %v684_v17, %v361_v21  ;;  %v742_v23 = vpop.f32.mrb[3].mxu0  ;;  %v365_v24 = vmax.f32 %v359_v19, 0.0 }
 0x109   : > { %v366_v25 = vmax.f32 %v362_v22, 0.0 }
 0x10b   : > { %v367_v26 = vpack.c.bf16 %v366_v25, %v365_v24 }
 0x10d   : > { %760 = vmatmul.mubr.bf16.vlgmr.msra.gmra.mrb[0].mxu1 %v367_v26 }
 0x1e0   : > { %v473_v30 = vpop.f32.mrb[0].mxu1 }
 0x1e1   : > { %v474_v31 = vadd.f32 %v688_v29, %v473_v30  ;;  %v761_v32 = vpop.f32.mrb[1].mxu1 }
 0x1e2   : > { %v476_v33 = vpop.f32.mrb[2].mxu1 }
 0x1e3   : > { %v477_v34 = vadd.f32 %v688_v29, %v476_v33  ;;  %v762_v35 = vpop.f32.mrb[3].mxu1  ;;  %v480_v36 = vmax.f32 %v474_v31, 0.0 }
 0x1e5   : > { %v481_v37 = vmax.f32 %v477_v34, 0.0 }
 0x1e7   : > { %v482_v38 = vpack.c.bf16 %v481_v37, %v480_v36 }
 0x1e9   : > { %780 = vmatmul.mubr.bf16.vlgmr.msra.gmra.mrb[4].mxu0 %v482_v38 }
 0x2bc   : > { %v588_v40 = vpop.f32.mrb[4].mxu0 }
 0x2bd   : > { %v781_v41 = vpop.f32.mrb[5].mxu0  ;;  %v589_v43 = vadd.f32 %v697_v39, %v588_v40 }
 0x2be   : > { %v591_v42 = vpop.f32.mrb[6].mxu0 }
 0x2bf   : > { %v592_v44 = vadd.f32 %v697_v39, %v591_v42  ;;  %v782_v45 = vpop.f32.mrb[7].mxu0 }
 0x2c1   : > { %v715_v46 = vpack.c.bf16 %v592_v44, %v589_v43 }
 0x2c3   : > { %716 = vst [vmem:[%s295_s9] sm:$0xff] %v715_v46  }
 0x2c4 PF: > { %s18_s24 = sadd.s32 1, %s862_s24  }
 0x2c5   : > { %p15_p3 = scmp.ge.s32.totalorder %s18_s24, 4  }
 0x2c7   :  { %17 = sbr.rel (!%p15_p3) target bundleno = 1 (0x1), region = 83 }
 0x2ce   :  { %627 = vsyncpa [#allocation3], 1 }
 0x2cf   :  { %629 = vsyncpa [#allocation3 + $0x1], 1 }

</bundles_post_ra>
